<compile_context>
chip_gen: v6e
topology: v6e:2x2x1
jax: 0.10.0
libtpu: 0.0.40
codegen_flags: <defaults>
</compile_context>

<pallas_src>
import jax
import jax.numpy as jnp
from jax.experimental import pallas as pl
from jax.experimental.pallas import tpu as pltpu


def _round_up(v, m):
    return (v + m - 1) // m * m


def _down_wt_kernel(x_ref, w_ref, b_ref, o_ref):
    # one MXU matmul per tile: (tm, 4C) @ (4C, No) -> f32 acc
    acc = jnp.dot(x_ref[...], w_ref[...], preferred_element_type=jnp.float32)
    acc = acc + b_ref[...]                      # folded BN bias
    o_ref[...] = jnp.maximum(acc, 0.0).astype(o_ref.dtype)   # ReLU


def down_wt_forward(x, conv_w, conv_b, bn_gamma, bn_beta, bn_mean, bn_var,
                    eps=1e-5, tm=512):
    """x: (N, C, H, W).  conv_w: (out_ch, 4*C).  Returns (N, out_ch, H//2, W//2)."""
    N, C, H, W = x.shape
    # TODO(synk): odd H/W would need pytorch_wavelets mode='zero' edge padding; assume even.
    assert H % 2 == 0 and W % 2 == 0, "Down_wt Pallas kernel assumes even H, W"
    out_ch = conv_w.shape[0]
    Ho, Wo = H // 2, W // 2
    M = N * Ho * Wo
    K = 4 * C

    # --- single fused layout pass: per output pixel the feature is [a; b; c; d] ---
    # a=x[...,0::2,0::2], b=x[...,0::2,1::2], c=x[...,1::2,0::2], d=x[...,1::2,1::2]
    xf = x.reshape(N, C, Ho, 2, Wo, 2)
    xf = jnp.transpose(xf, (0, 2, 4, 3, 5, 1)).reshape(M, K)

    # --- fold eval-mode BatchNorm into the 1x1 conv, then fold the Haar butterfly ---
    scale = (bn_gamma / jnp.sqrt(bn_var + eps)).astype(jnp.float32)      # (out_ch,)
    w_f = (conv_w.astype(jnp.float32) * scale[:, None]).T                # (4C, out_ch)
    w0, w1, w2, w3 = w_f[0:C], w_f[C:2 * C], w_f[2 * C:3 * C], w_f[3 * C:4 * C]
    wA = (w0 + w1 + w2 + w3) * 0.5   # multiplies a
    wB = (w0 - w1 + w2 - w3) * 0.5   # multiplies b
    wC = (w0 + w1 - w2 - w3) * 0.5   # multiplies c
    wD = (w0 - w1 - w2 + w3) * 0.5   # multiplies d
    w_fused = jnp.concatenate([wA, wB, wC, wD], axis=0)                  # (4C, out_ch)
    b_f = ((conv_b - bn_mean) * scale + bn_beta).astype(jnp.float32)     # (out_ch,)

    # --- lane-dense output: pad out_ch up to a multiple of 128 (sliced off below) ---
    No = _round_up(max(out_ch, 128), 128)
    if No != out_ch:
        w_fused = jnp.pad(w_fused, ((0, 0), (0, No - out_ch)))
        b_f = jnp.pad(b_f, (0, No - out_ch))
    w_fused = w_fused.astype(x.dtype)            # bf16 inputs go straight to the MXU
    bias2d = b_f.reshape(1, No)

    # --- row-tile selection: big tiles for the mem-bound stream, bounded by VMEM ---
    tm_eff = min(tm, _round_up(M, 8))
    tm_eff = max(8, (tm_eff // 8) * 8)
    itemsize = jnp.dtype(x.dtype).itemsize
    vmem_budget = 24 * 1024 * 1024               # conservative (fits v7x 64 MiB / default scoped)

    def _step_bytes(t):
        return 2 * (t * K * itemsize + t * No * itemsize) + K * No * itemsize + No * 4

    while tm_eff > 8 and _step_bytes(tm_eff) > vmem_budget:
        tm_eff = max(8, (tm_eff // 2 // 8) * 8)

    # pad only the single fused operand, once
    Mp = _round_up(M, tm_eff)
    if Mp != M:
        xf = jnp.pad(xf, ((0, Mp - M), (0, 0)))

    grid = (Mp // tm_eff,)

    out = pl.pallas_call(
        _down_wt_kernel,
        out_shape=jax.ShapeDtypeStruct((Mp, No), x.dtype),
        grid_spec=pltpu.PrefetchScalarGridSpec(
            num_scalar_prefetch=0,
            grid=grid,
            in_specs=[
                pl.BlockSpec((tm_eff, K), lambda i: (i, 0)),   # fused activations
                pl.BlockSpec((K, No), lambda i: (0, 0)),       # fused weights (resident)
                pl.BlockSpec((1, No), lambda i: (0, 0)),       # folded bias (resident)
            ],
            out_specs=pl.BlockSpec((tm_eff, No), lambda i: (i, 0)),
        ),
        compiler_params=pltpu.CompilerParams(
            dimension_semantics=("parallel",)),                # shards across v7x's 2 TCs
    )(xf, w_fused, bias2d)

    out = out[:M, :out_ch].reshape(N, Ho, Wo, out_ch)
    return jnp.transpose(out, (0, 3, 1, 2))                    # back to NCHW


def _reference(x, conv_w, conv_b, bn_gamma, bn_beta, bn_mean, bn_var, eps=1e-5):
    """Pure-JAX reference of the same forward pass (for correctness checking)."""
    a = x[:, :, 0::2, 0::2]
    b = x[:, :, 0::2, 1::2]
    c = x[:, :, 1::2, 0::2]
    d = x[:, :, 1::2, 1::2]
    ll = (a + b + c + d) * 0.5
    hl = (a - b + c - d) * 0.5
    lh = (a + b - c - d) * 0.5
    hh = (a - b - c + d) * 0.5
    feat = jnp.concatenate([ll, hl, lh, hh], axis=1)           # (N, 4C, Ho, Wo)
    y = jnp.einsum('oc,nchw->nohw', conv_w, feat) + conv_b[None, :, None, None]
    scale = bn_gamma / jnp.sqrt(bn_var + eps)
    y = (y - bn_mean[None, :, None, None]) * scale[None, :, None, None] \
        + bn_beta[None, :, None, None]
    return jnp.maximum(y, 0.0)


def _make_params(key, C, out_ch):
    ks = jax.random.split(key, 6)
    conv_w = 0.1 * jax.random.normal(ks[0], (out_ch, 4 * C), jnp.float32)
    conv_b = 0.1 * jax.random.normal(ks[1], (out_ch,), jnp.float32)
    bn_gamma = 1.0 + 0.1 * jax.random.normal(ks[2], (out_ch,), jnp.float32)
    bn_beta = 0.1 * jax.random.normal(ks[3], (out_ch,), jnp.float32)
    bn_mean = 0.1 * jax.random.normal(ks[4], (out_ch,), jnp.float32)
    bn_var = 0.5 + jnp.abs(jax.random.normal(ks[5], (out_ch,), jnp.float32))
    return conv_w, conv_b, bn_gamma, bn_beta, bn_mean, bn_var


if __name__ == "__main__":
    key = jax.random.PRNGKey(0)
    fwd = jax.jit(down_wt_forward)

    # Test 1: module-spec shapes (Conv2d(4*C, out_ch, 1) + BatchNorm2d + ReLU)
    N, C, H, W, out_ch = 2, 4, 16, 16, 8
    k_x, k_p, key = jax.random.split(key, 3)
    x = jax.random.normal(k_x, (N, C, H, W), jnp.float32)
    params = _make_params(k_p, C, out_ch)
    y = jax.block_until_ready(fwd(x, *params))
    y_ref = _reference(x, *params)
    assert y.shape == (N, out_ch, H // 2, W // 2)
    assert jnp.allclose(y, y_ref, atol=1e-3, rtol=1e-3)

    # Test 2: non-trivial channel counts to exercise the lane-padding / fused-K path
    N2, C2, H2, W2, out_ch2 = 2, 32, 16, 16, 40
    k_x2, k_p2, key = jax.random.split(key, 3)
    x2 = jax.random.normal(k_x2, (N2, C2, H2, W2), jnp.float32)
    params2 = _make_params(k_p2, C2, out_ch2)
    y2 = jax.block_until_ready(fwd(x2, *params2))
    y2_ref = _reference(x2, *params2)
    assert y2.shape == (N2, out_ch2, H2 // 2, W2 // 2)
    assert jnp.allclose(y2, y2_ref, atol=1e-3, rtol=1e-3)

    print("KERNEL_OK")
</pallas_src>

<mosaic_0001>
module attributes {stable_mosaic.version = 11 : i64} {
  func.func @_down_wt_kernel(%arg0: i32, %arg1: memref<128x16xf32, #tpu.memory_space<vmem>>, %arg2: memref<16x128xf32, #tpu.memory_space<vmem>>, %arg3: memref<1x128xf32, #tpu.memory_space<vmem>>, %arg4: memref<128x128xf32, #tpu.memory_space<vmem>>) attributes {dimension_semantics = [#tpu.dimension_semantics<parallel>], iteration_bounds = array<i64: 1>, scalar_prefetch = 0 : i64, scratch_operands = 0 : i64, tpu.core_type = #tpu.core_type<tc>, window_params = [{transform_indices = @transform_0, window_bounds = array<i64: 128, 16>}, {pipeline_mode = #tpu.pipeline_mode<synchronous>, transform_indices = @transform_1, window_bounds = array<i64: 16, 128>}, {pipeline_mode = #tpu.pipeline_mode<synchronous>, transform_indices = @transform_2, window_bounds = array<i64: 1, 128>}, {transform_indices = @transform_3, window_bounds = array<i64: 128, 128>}]} {
    %c0 = arith.constant 0 : index
    %c0_0 = arith.constant 0 : index
    %0 = vector.load %arg1[%c0, %c0_0] : memref<128x16xf32, #tpu.memory_space<vmem>>, vector<128x16xf32>
    %c0_1 = arith.constant 0 : index
    %c0_2 = arith.constant 0 : index
    %1 = vector.load %arg2[%c0_1, %c0_2] : memref<16x128xf32, #tpu.memory_space<vmem>>, vector<16x128xf32>
    %cst = arith.constant dense<0.000000e+00> : vector<128x128xf32>
    %2 = tpu.matmul %0, %1, %cst {dimension_numbers = #tpu.dot_dimension_numbers<[1], [0], [0], [1], [0, 0, 1, 1], [], []>} : vector<128x16xf32>, vector<16x128xf32>, vector<128x128xf32> -> vector<128x128xf32>
    %c0_3 = arith.constant 0 : index
    %c0_4 = arith.constant 0 : index
    %3 = vector.load %arg3[%c0_3, %c0_4] : memref<1x128xf32, #tpu.memory_space<vmem>>, vector<1x128xf32>
    %4 = vector.broadcast %3 : vector<1x128xf32> to vector<128x128xf32>
    %5 = arith.addf %2, %4 : vector<128x128xf32>
    %cst_5 = arith.constant 0.000000e+00 : f32
    %6 = vector.broadcast %cst_5 : f32 to vector<128x128xf32>
    %7 = arith.maximumf %5, %6 : vector<128x128xf32>
    %c0_6 = arith.constant 0 : index
    %c0_7 = arith.constant 0 : index
    %8 = vector.load %arg4[%c0_6, %c0_7] : memref<128x128xf32, #tpu.memory_space<vmem>>, vector<128x128xf32>
    tpu.vector_store %arg4[%c0_6, %c0_7], %7 {strides = array<i32>} : memref<128x128xf32, #tpu.memory_space<vmem>>, vector<128x128xf32>,
    return
  }
  func.func @transform_0(%arg0: i32) -> (i32, i32) {
    %c0_i32 = arith.constant 0 : i32
    %c0_i32_0 = arith.constant 0 : i32
    return %arg0, %c0_i32 : i32, i32
  }
  func.func @transform_1(%arg0: i32) -> (i32, i32) {
    %c0_i32 = arith.constant 0 : i32
    %c0_i32_0 = arith.constant 0 : i32
    %c0_i32_1 = arith.constant 0 : i32
    return %c0_i32, %c0_i32_0 : i32, i32
  }
  func.func @transform_2(%arg0: i32) -> (i32, i32) {
    %c0_i32 = arith.constant 0 : i32
    %c0_i32_0 = arith.constant 0 : i32
    %c0_i32_1 = arith.constant 0 : i32
    return %c0_i32, %c0_i32_0 : i32, i32
  }
  func.func @transform_3(%arg0: i32) -> (i32, i32) {
    %c0_i32 = arith.constant 0 : i32
    %c0_i32_0 = arith.constant 0 : i32
    return %arg0, %c0_i32 : i32, i32
  }
}

</mosaic_0001>

<bundles_post_ra>
// kernel: down_wt_forward.1
= control target key start
LH: loop header
LB: loop body
LE: loop exit
PB: predicated region body
PF: predicated region fallthrough
CT: control target
= control target key end

     0   :  { %vm39_vm0 = vcmask 130048   ;;  %s477_s1 = inlined_call_operand.vmem [shape: f32[16,128], index: 1, kind: input, shape index: {}]   ;;  %s478_s0 = inlined_call_operand.vmem [shape: f32[128,16], index: 0, kind: input, shape index: {}]   ;;  %s479_s2 = inlined_call_operand.vmem [shape: f32[1,128], index: 2, kind: input, shape index: {}]   ;;  %s480_s3 = inlined_call_operand.vmem [shape: f32[128,128], index: 3, kind: output, shape index: {}]  }
   0x1   :  { %v31_v0 = vld [vmem:[%s477_s1 + $0x8] sm:$0xff]  ;;  %v30_v1 = vld [vmem:[%s477_s1] sm:$0xff]  ;;  %v16_v6 = vld [vmem:[%s478_s0 + $0x10] sm:$0xff] }
   0x2   :  { %304 = vmatprep.subr.mxu0 %v31_v0  ;;  %332 = vmatprep.subr.mxu1 %v31_v0  ;;  %v14_v2 = vld [vmem:[%s478_s0] sm:$0xff]  ;;  %v15_v4 = vld [vmem:[%s478_s0 + $0x8] sm:$0xff]  ;;  %v24_v7 = vld [vmem:[%s478_s0 + $0x50] sm:$0xff] }
   0x3   :  { %305 = vmatpush3.msra.mxu0 %v31_v0  ;;  %334 = vmatpush3.msra.mxu1 %v31_v0  ;;  %v22_v3 = vld [vmem:[%s478_s0 + $0x40] sm:$0xff]  ;;  %v23_v5 = vld [vmem:[%s478_s0 + $0x48] sm:$0xff]  ;;  %v17_v8 = vld [vmem:[%s478_s0 + $0x18] sm:$0xff] }
   0x4   :  { %306 = vmatprep.subr.mxu0 %v30_v1  ;;  %333 = vmatprep.subr.mxu1 %v30_v1  ;;  %v25_v9 = vld [vmem:[%s478_s0 + $0x58] sm:$0xff]  ;;  %v18_v10 = vld [vmem:[%s478_s0 + $0x20] sm:$0xff]  ;;  %v19_v12 = vld [vmem:[%s478_s0 + $0x28] sm:$0xff] }
   0x5   :  { %307 = vmatpush3.msra.mxu0 %v30_v1  ;;  %335 = vmatpush3.msra.mxu1 %v30_v1  ;;  %v26_v11 = vld [vmem:[%s478_s0 + $0x60] sm:$0xff]  ;;  %v27_v13 = vld [vmem:[%s478_s0 + $0x68] sm:$0xff]  ;;  %v20_v14 = vld [vmem:[%s478_s0 + $0x30] sm:$0xff] }
   0x6   :  { %308 = vmatprep.mubr.msk.f32.mxu0 %vm39_vm0, %v14_v2  ;;  %320 = vmatprep.mubr.msk.f32.mxu1 %vm39_vm0, %v22_v3  ;;  %v28_v15 = vld [vmem:[%s478_s0 + $0x70] sm:$0xff]  ;;  %v21_v16 = vld [vmem:[%s478_s0 + $0x38] sm:$0xff]  ;;  %v269_v18 = vld [vmem:[%s479_s2] ss:$0 sm:$0xff] }
   0x7   :  { %309 = vmatmul.mubr.msk.f32.vlgmr.msra.gmra.mxu0 %vm39_vm0, %v15_v4  ;;  %321 = vmatmul.mubr.msk.f32.vlgmr.msra.gmra.mxu1 %vm39_vm0, %v23_v5  ;;  %v29_v17 = vld [vmem:[%s478_s0 + $0x78] sm:$0xff] }
   0x8   :  { %311 = vmatprep.mubr.msk.f32.mxu0 %vm39_vm0, %v16_v6  ;;  %323 = vmatprep.mubr.msk.f32.mxu1 %vm39_vm0, %v24_v7 }
   0xb   :  { %312 = vmatmul.mubr.msk.f32.gmra.mxu0 %vm39_vm0, %v17_v8  ;;  %324 = vmatmul.mubr.msk.f32.gmra.mxu1 %vm39_vm0, %v25_v9 }
   0xc   :  { %314 = vmatprep.mubr.msk.f32.mxu0 %vm39_vm0, %v18_v10  ;;  %326 = vmatprep.mubr.msk.f32.mxu1 %vm39_vm0, %v26_v11 }
   0xf   :  { %315 = vmatmul.mubr.msk.f32.gmra.mxu0 %vm39_vm0, %v19_v12  ;;  %327 = vmatmul.mubr.msk.f32.gmra.mxu1 %vm39_vm0, %v27_v13 }
  0x10   :  { %317 = vmatprep.mubr.msk.f32.mxu0 %vm39_vm0, %v20_v14  ;;  %329 = vmatprep.mubr.msk.f32.mxu1 %vm39_vm0, %v28_v15 }
  0x13   :  { %318 = vmatmul.mubr.msk.f32.gmra.mxu0 %vm39_vm0, %v21_v16  ;;  %330 = vmatmul.mubr.msk.f32.gmra.mxu1 %vm39_vm0, %v29_v17 }
  0xc7   :  { %v310_v19 = vpop.f32.mrf.mxu0  ;;  %v322_v20 = vpop.f32.mrf.mxu1 }
  0xc8   :  { %v160_v21 = vadd.f32 %v310_v19, %v269_v18  ;;  %v200_v22 = vadd.f32 %v322_v20, %v269_v18 }
  0xc9   :  { %v154_v23 = vpop.f32.mrf.mxu0  ;;  %v194_v24 = vpop.f32.mrf.mxu1 }
  0xca   :  { %v234_v25 = vmax.f32 %v160_v21, 0.0  ;;  %v242_v26 = vmax.f32 %v200_v22, 0.0  ;;  %v155_v27 = vadd.f32 %v269_v18, %v154_v23  ;;  %v195_v28 = vadd.f32 %v269_v18, %v194_v24 }
  0xcb   :  { %v313_v29 = vpop.f32.mrf.mxu0  ;;  %v325_v30 = vpop.f32.mrf.mxu1 }
  0xcc   :  { %250 = vst [vmem:[%s480_s3 + $0x8] sm:$0xff] %v234_v25  ;;  %258 = vst [vmem:[%s480_s3 + $0x48] sm:$0xff] %v242_v26  ;;  %v233_v31 = vmax.f32 %v155_v27, 0.0  ;;  %v241_v32 = vmax.f32 %v195_v28, 0.0  ;;  %v170_v33 = vadd.f32 %v313_v29, %v269_v18  ;;  %v210_v34 = vadd.f32 %v325_v30, %v269_v18 }
  0xcd   :  { %v164_v35 = vpop.f32.mrf.mxu0  ;;  %v204_v36 = vpop.f32.mrf.mxu1 }
  0xce   :  { %249 = vst [vmem:[%s480_s3] sm:$0xff] %v233_v31  ;;  %257 = vst [vmem:[%s480_s3 + $0x40] sm:$0xff] %v241_v32  ;;  %v236_v37 = vmax.f32 %v170_v33, 0.0  ;;  %v244_v38 = vmax.f32 %v210_v34, 0.0  ;;  %v165_v39 = vadd.f32 %v269_v18, %v164_v35  ;;  %v205_v40 = vadd.f32 %v269_v18, %v204_v36 }
  0xcf   :  { %v316_v41 = vpop.f32.mrf.mxu0  ;;  %v328_v42 = vpop.f32.mrf.mxu1 }
  0xd0   :  { %252 = vst [vmem:[%s480_s3 + $0x18] sm:$0xff] %v236_v37  ;;  %260 = vst [vmem:[%s480_s3 + $0x58] sm:$0xff] %v244_v38  ;;  %v235_v43 = vmax.f32 %v165_v39, 0.0  ;;  %v243_v44 = vmax.f32 %v205_v40, 0.0  ;;  %v180_v45 = vadd.f32 %v316_v41, %v269_v18  ;;  %v220_v46 = vadd.f32 %v328_v42, %v269_v18 }
  0xd1   :  { %v174_v47 = vpop.f32.mrf.mxu0  ;;  %v214_v48 = vpop.f32.mrf.mxu1 }
  0xd2   :  { %251 = vst [vmem:[%s480_s3 + $0x10] sm:$0xff] %v235_v43  ;;  %259 = vst [vmem:[%s480_s3 + $0x50] sm:$0xff] %v243_v44  ;;  %v238_v49 = vmax.f32 %v180_v45, 0.0  ;;  %v246_v50 = vmax.f32 %v220_v46, 0.0  ;;  %v175_v51 = vadd.f32 %v269_v18, %v174_v47  ;;  %v215_v52 = vadd.f32 %v269_v18, %v214_v48 }
  0xd3   :  { %v319_v53 = vpop.f32.mrf.mxu0  ;;  %v331_v54 = vpop.f32.mrf.mxu1 }
  0xd4   :  { %254 = vst [vmem:[%s480_s3 + $0x28] sm:$0xff] %v238_v49  ;;  %262 = vst [vmem:[%s480_s3 + $0x68] sm:$0xff] %v246_v50  ;;  %v237_v55 = vmax.f32 %v175_v51, 0.0  ;;  %v245_v56 = vmax.f32 %v215_v52, 0.0  ;;  %v190_v57 = vadd.f32 %v319_v53, %v269_v18  ;;  %v230_v58 = vadd.f32 %v331_v54, %v269_v18 }
  0xd5   :  { %v184_v59 = vpop.f32.mrf.mxu0  ;;  %v224_v60 = vpop.f32.mrf.mxu1 }
  0xd6   :  { %253 = vst [vmem:[%s480_s3 + $0x20] sm:$0xff] %v237_v55  ;;  %261 = vst [vmem:[%s480_s3 + $0x60] sm:$0xff] %v245_v56  ;;  %v240_v61 = vmax.f32 %v190_v57, 0.0  ;;  %v248_v62 = vmax.f32 %v230_v58, 0.0  ;;  %v185_v63 = vadd.f32 %v269_v18, %v184_v59  ;;  %v225_v0 = vadd.f32 %v269_v18, %v224_v60 }
  0xd8   :  { %256 = vst [vmem:[%s480_s3 + $0x38] sm:$0xff] %v240_v61  ;;  %264 = vst [vmem:[%s480_s3 + $0x78] sm:$0xff] %v248_v62  ;;  %v239_v1 = vmax.f32 %v185_v63, 0.0  ;;  %v247_v2 = vmax.f32 %v225_v0, 0.0 }
  0xda   :  { %255 = vst [vmem:[%s480_s3 + $0x30] sm:$0xff] %v239_v1  ;;  %263 = vst [vmem:[%s480_s3 + $0x70] sm:$0xff] %v247_v2 }

</bundles_post_ra>
